<compile_context>
chip_gen: v5e
topology: v5e:2x2
jax: 0.10.0
libtpu: 0.0.40
codegen_flags: <defaults>
</compile_context>

<pallas_src>
import jax
import jax.numpy as jnp
from jax.experimental import pallas as pl
from jax.experimental.pallas import tpu as pltpu


def mlp_kernel(xT_ref, w1_ref, b1_ref, w2_ref, b2_ref, o_ref):
    # Layer 1: h = W1 @ x^T + b1  -> (64, TILE_B); bf16 MXU matmul, f32 accumulate.
    h = jnp.dot(w1_ref[...], xT_ref[...],
                preferred_element_type=jnp.float32) + b1_ref[...]
    # LeakyReLU (PyTorch default negative_slope = 0.01), kept in f32 on the VPU.
    h = jnp.where(h > 0, h, 0.01 * h)
    # Layer 2: y = W2 @ h + b2  -> (2, TILE_B); cast h to bf16 only for the MXU.
    y = jnp.dot(w2_ref[...], h.astype(w2_ref.dtype),
                preferred_element_type=jnp.float32) + b2_ref[...]
    o_ref[...] = y.astype(o_ref.dtype)


def _round_up(x, m):
    return (x + m - 1) // m * m


def mlp_forward(x, w1, b1, w2, b2, *, tile_b=512):
    """
    x  : (B, in)        float32  (PyTorch-style activations)
    w1 : (hidden, in)   bfloat16 (PyTorch nn.Linear (out, in) layout)
    b1 : (hidden, 1)    float32
    w2 : (out, hidden)  bfloat16
    b2 : (out, 1)       float32
    Returns (B, out) in x.dtype.
    """
    B, in_dim = x.shape
    hid = w1.shape[0]
    out_dim = w2.shape[0]

    # Lane-dense layout: put batch on the lane axis; bf16 halves the HBM stream.
    xT = x.T.astype(w1.dtype)                         # (in, B)

    # Batch tile: lane dim of a block must be a multiple of 128 (or full extent).
    tb = min(tile_b, _round_up(B, 128))
    Bp = _round_up(B, tb)
    if Bp != B:
        xT = jnp.pad(xT, ((0, 0), (0, Bp - B)))
    grid = (Bp // tb,)

    yT = pl.pallas_call(
        mlp_kernel,
        out_shape=jax.ShapeDtypeStruct((out_dim, Bp), jnp.float32),
        grid_spec=pltpu.PrefetchScalarGridSpec(
            num_scalar_prefetch=0,
            grid=grid,
            in_specs=[
                pl.BlockSpec((in_dim, tb), lambda i: (0, i)),    # streamed x tile
                pl.BlockSpec((hid, in_dim), lambda i: (0, 0)),   # resident weights
                pl.BlockSpec((hid, 1), lambda i: (0, 0)),
                pl.BlockSpec((out_dim, hid), lambda i: (0, 0)),
                pl.BlockSpec((out_dim, 1), lambda i: (0, 0)),
            ],
            out_specs=pl.BlockSpec((out_dim, tb), lambda i: (0, i)),
        ),
        compiler_params=pltpu.CompilerParams(
            # v7x megacore: shard independent batch tiles across both TCs.
            dimension_semantics=("parallel",),
        ),
    )(xT, w1, b1, w2, b2)

    # Undo the wrapper-side layout plumbing and drop batch padding.
    return yT[:, :B].T.astype(x.dtype)


def init_linear_params(key, fan_in, fan_out, *, w_dtype=jnp.bfloat16):
    # PyTorch nn.Linear default init: U(-1/sqrt(fan_in), 1/sqrt(fan_in)) for W and b.
    # Weight kept in PyTorch (out, in) layout; bias stored as an (out, 1) column (f32).
    kw, kb = jax.random.split(key)
    bound = 1.0 / (fan_in ** 0.5)
    w = jax.random.uniform(kw, (fan_out, fan_in), jnp.float32, -bound, bound)
    b = jax.random.uniform(kb, (fan_out, 1), jnp.float32, -bound, bound)
    return w.astype(w_dtype), b


if __name__ == "__main__":
    key = jax.random.PRNGKey(0)
    k_x, k1, k2 = jax.random.split(key, 3)

    size_list = [7, 64, 2]   # matches Mlp(size_list=[7, 64, 2])
    B = 1024                 # two 512-column tiles -> exercises the batch grid
    x = jax.random.normal(k_x, (B, size_list[0]), jnp.float32)
    w1, b1 = init_linear_params(k1, size_list[0], size_list[1])
    w2, b2 = init_linear_params(k2, size_list[1], size_list[2])

    out = mlp_forward(x, w1, b1, w2, b2, tile_b=512)
    out = jax.block_until_ready(out)

    # Pure-JAX reference with identical bf16-input / f32-accumulate semantics.
    xf = x.astype(jnp.bfloat16).astype(jnp.float32)
    w1f = w1.astype(jnp.float32)
    w2f = w2.astype(jnp.float32)
    h = xf @ w1f.T + b1.T
    h = jnp.where(h > 0, h, 0.01 * h)
    ref = h.astype(jnp.bfloat16).astype(jnp.float32) @ w2f.T + b2.T

    assert out.shape == (B, size_list[-1])
    assert jnp.allclose(out, ref, atol=1e-2, rtol=1e-2), \
        float(jnp.max(jnp.abs(out - ref)))

    print("KERNEL_OK")
</pallas_src>

<mosaic_0001>
module attributes {stable_mosaic.version = 11 : i64} {
  func.func @mlp_kernel(%arg0: i32, %arg1: memref<7x512xbf16, #tpu.memory_space<vmem>>, %arg2: memref<64x7xbf16, #tpu.memory_space<vmem>>, %arg3: memref<64x1xf32, #tpu.memory_space<vmem>>, %arg4: memref<2x64xbf16, #tpu.memory_space<vmem>>, %arg5: memref<2x1xf32, #tpu.memory_space<vmem>>, %arg6: memref<2x512xf32, #tpu.memory_space<vmem>>) attributes {dimension_semantics = [#tpu.dimension_semantics<parallel>], iteration_bounds = array<i64: 2>, scalar_prefetch = 0 : i64, scratch_operands = 0 : i64, tpu.core_type = #tpu.core_type<tc>, window_params = [{transform_indices = @transform_0, window_bounds = array<i64: 7, 512>}, {pipeline_mode = #tpu.pipeline_mode<synchronous>, transform_indices = @transform_1, window_bounds = array<i64: 64, 7>}, {pipeline_mode = #tpu.pipeline_mode<synchronous>, transform_indices = @transform_2, window_bounds = array<i64: 64, 1>}, {pipeline_mode = #tpu.pipeline_mode<synchronous>, transform_indices = @transform_3, window_bounds = array<i64: 2, 64>}, {pipeline_mode = #tpu.pipeline_mode<synchronous>, transform_indices = @transform_4, window_bounds = array<i64: 2, 1>}, {transform_indices = @transform_5, window_bounds = array<i64: 2, 512>}]} {
    %c0 = arith.constant 0 : index
    %c0_0 = arith.constant 0 : index
    %0 = vector.load %arg2[%c0, %c0_0] : memref<64x7xbf16, #tpu.memory_space<vmem>>, vector<64x7xbf16>
    %c0_1 = arith.constant 0 : index
    %c0_2 = arith.constant 0 : index
    %1 = vector.load %arg1[%c0_1, %c0_2] : memref<7x512xbf16, #tpu.memory_space<vmem>>, vector<7x512xbf16>
    %cst = arith.constant dense<0.000000e+00> : vector<64x512xf32>
    %2 = tpu.matmul %0, %1, %cst {dimension_numbers = #tpu.dot_dimension_numbers<[1], [0], [0], [1], [0, 0, 1, 1], [], []>} : vector<64x7xbf16>, vector<7x512xbf16>, vector<64x512xf32> -> vector<64x512xf32>
    %c0_3 = arith.constant 0 : index
    %c0_4 = arith.constant 0 : index
    %3 = vector.load %arg3[%c0_3, %c0_4] : memref<64x1xf32, #tpu.memory_space<vmem>>, vector<64x1xf32>
    %4 = vector.broadcast %3 : vector<64x1xf32> to vector<64x512xf32>
    %5 = arith.addf %2, %4 : vector<64x512xf32>
    %cst_5 = arith.constant 0.000000e+00 : f32
    %6 = vector.broadcast %cst_5 : f32 to vector<64x512xf32>
    %7 = arith.cmpf ogt, %5, %6 : vector<64x512xf32>
    %cst_6 = arith.constant 0.00999999977 : f32
    %8 = vector.broadcast %cst_6 : f32 to vector<64x512xf32>
    %9 = arith.mulf %8, %5 : vector<64x512xf32>
    %10 = arith.select %7, %5, %9 : vector<64x512xi1>, vector<64x512xf32>
    %c0_7 = arith.constant 0 : index
    %c0_8 = arith.constant 0 : index
    %11 = vector.load %arg4[%c0_7, %c0_8] : memref<2x64xbf16, #tpu.memory_space<vmem>>, vector<2x64xbf16>
    %12 = arith.truncf %10 : vector<64x512xf32> to vector<64x512xbf16>
    %cst_9 = arith.constant dense<0.000000e+00> : vector<2x512xf32>
    %13 = tpu.matmul %11, %12, %cst_9 {dimension_numbers = #tpu.dot_dimension_numbers<[1], [0], [0], [1], [0, 0, 1, 1], [], []>} : vector<2x64xbf16>, vector<64x512xbf16>, vector<2x512xf32> -> vector<2x512xf32>
    %c0_10 = arith.constant 0 : index
    %c0_11 = arith.constant 0 : index
    %14 = vector.load %arg5[%c0_10, %c0_11] : memref<2x1xf32, #tpu.memory_space<vmem>>, vector<2x1xf32>
    %15 = vector.broadcast %14 : vector<2x1xf32> to vector<2x512xf32>
    %16 = arith.addf %13, %15 : vector<2x512xf32>
    %c0_12 = arith.constant 0 : index
    %c0_13 = arith.constant 0 : index
    %17 = vector.load %arg6[%c0_12, %c0_13] : memref<2x512xf32, #tpu.memory_space<vmem>>, vector<2x512xf32>
    tpu.vector_store %arg6[%c0_12, %c0_13], %16 {strides = array<i32>} : memref<2x512xf32, #tpu.memory_space<vmem>>, vector<2x512xf32>,
    return
  }
  func.func @transform_0(%arg0: i32) -> (i32, i32) {
    %c0_i32 = arith.constant 0 : i32
    %c0_i32_0 = arith.constant 0 : i32
    return %c0_i32, %arg0 : i32, i32
  }
  func.func @transform_1(%arg0: i32) -> (i32, i32) {
    %c0_i32 = arith.constant 0 : i32
    %c0_i32_0 = arith.constant 0 : i32
    %c0_i32_1 = arith.constant 0 : i32
    return %c0_i32, %c0_i32_0 : i32, i32
  }
  func.func @transform_2(%arg0: i32) -> (i32, i32) {
    %c0_i32 = arith.constant 0 : i32
    %c0_i32_0 = arith.constant 0 : i32
    %c0_i32_1 = arith.constant 0 : i32
    return %c0_i32, %c0_i32_0 : i32, i32
  }
  func.func @transform_3(%arg0: i32) -> (i32, i32) {
    %c0_i32 = arith.constant 0 : i32
    %c0_i32_0 = arith.constant 0 : i32
    %c0_i32_1 = arith.constant 0 : i32
    return %c0_i32, %c0_i32_0 : i32, i32
  }
  func.func @transform_4(%arg0: i32) -> (i32, i32) {
    %c0_i32 = arith.constant 0 : i32
    %c0_i32_0 = arith.constant 0 : i32
    %c0_i32_1 = arith.constant 0 : i32
    return %c0_i32, %c0_i32_0 : i32, i32
  }
  func.func @transform_5(%arg0: i32) -> (i32, i32) {
    %c0_i32 = arith.constant 0 : i32
    %c0_i32_0 = arith.constant 0 : i32
    return %c0_i32, %arg0 : i32, i32
  }
}

</mosaic_0001>

<bundles_post_ra>
// kernel: tpu_custom_call.1
= control target key start
LH: loop header
LB: loop body
LE: loop exit
PB: predicated region body
PF: predicated region fallthrough
CT: control target
= control target key end

     0   :  { %10 = vsyncpa [#allocation3], 0  ;;  %s1191_s0 = inlined_call_operand.vmem [shape: bf16[7,1024], index: 0, kind: input, shape index: {}]   ;;  %s1192_s1 = inlined_call_operand.vmem [shape: bf16[64,7], index: 1, kind: input, shape index: {}]   ;;  %s1193_s2 = inlined_call_operand.vmem [shape: f32[64,1], index: 2, kind: input, shape index: {}]   ;;  %s1194_s3 = inlined_call_operand.vmem [shape: bf16[2,64], index: 3, kind: input, shape index: {}]   ;;  %s1195_s4 = inlined_call_operand.vmem [shape: f32[2,1], index: 4, kind: input, shape index: {}]   ;;  %s1196_s5 = inlined_call_operand.hbm [shape: f32[2,1024], index: 5, kind: output, shape index: {}]  }
   0x1   :  { %12 = vsyncpa [#allocation3 + $0x1], 0  ;;  %s918_s18 = smov 0   ;;  %s920_s19 = smov 0  }
   0x2   :  { %s922_s20 = smov 0   ;;  %s924_s21 = smov 0  }
   0x3 LB: > { %s939_s22 = sadd.s32 4294967295, %s884_s21   ;;  %s725_s23 = sadd.s32 4294967294, %s884_s21   ;;  %s884_s21 = sphi %s924_s21, %s1202_s21   ;;  %s880_s20 = sphi %s922_s20, %s1201_s20   ;;  %s876_s19 = sphi %s920_s19, %s1200_s19   ;;  %s872_s18 = sphi %s918_s18, %s1199_s18  }
   0x4   : > { %s943_s24 = sadd.s32 1, %s884_s21   ;;  %s135_s25 = sadd.s32 1, %s880_s20 }
   0x5   : > { %s132_s26 = ssub.s32 %s884_s21, %s943_s24  ;;  %p145_p0 = scmp.ne.s32.totalorder %s880_s20, %s876_s19 }
   0x6   : > { %p133_p1 = scmp.eq.s32.totalorder %s132_s26, 0  ;;  %p146_p2 = scmp.eq.s32.totalorder %s939_s22, 1 }
   0x7   : > { %p151_p3 = scmp.ne.s32.totalorder %s876_s19, %s872_s18  ;;  %p152_p4 = scmp.eq.s32.totalorder %s725_s23, 1 }
   0x8   : > { %s954_s27 = scalar_select %p133_p1, %s880_s20, %s135_s25  }
   0x9   : > { %p956_p5 = por %p146_p2, %p145_p0  ;;  %p960_p6 = por %p152_p4, %p151_p3 }
   0xa   : > { %p728_p7 = scmp.ge.s32.totalorder %s884_s21, 1  ;;  %p191_p8 = scmp.lt.s32.totalorder %s884_s21, 3 }
   0xc   : > { %p192_p9 = pnand %p728_p7, %p191_p8 }
   0xd   : > { %s730_s30 = sshll.u32 (!%p192_p9), %s939_s22, 2  ;;  %s216_s6 = sand.u32 (!%p192_p9), 1, %s876_s19  }
   0xe   : > { %195 = sbr.rel (%p192_p9) target bundleno = 386 (0x182), region = 40  ;;  %p220_p10 = scmp.lt.s32.totalorder (!%p192_p9), %s730_s30, 7 }
   0xf   : > { %s729_s7 = sshll.u32 (!%p192_p9), %s216_s6, 3  ;;  %s777_s8 = sshll.u32 (!%p192_p9), %s939_s22, 3 }
  0x10   : > { %s661_s11 = scalar_lea.hbm (!%p192_p9), %s1196_s5, %s777_s8  ;;  %s218_s12 = scalar_lea.vmem (!%p192_p9), [#allocation2], %s729_s7 }
  0x11   : > { %s665_s14 = sshll.u32 (!%p192_p9), %s661_s11, 4  ;;  %s650_s22 = scalar_lea.sflag (!%p192_p9), [#allocation3], %s216_s6  ;;  %s666_s14 = int_to_ptr.hbm [resolvable:$true] %s665_s14 }
  0x12   : > { %s836_s15 = sshra.s32 (!%p192_p9), %s666_s14, 4  ;;  %s842_s25 = scalar_lea.hbm (!%p192_p9), %s1196_s5, 16  ;;  %s837_s15 = int_to_ptr.hbm [resolvable:$true] %s836_s15 }
  0x13   : > { %v886_v0 = vmov 0   ;;  %v243_v1 = vld [vmem:[%s1193_s2 + $0x30] sm:$0xff]  ;;  %v241_v2 = vld [vmem:[%s1193_s2 + $0x20] sm:$0xff]  ;;  %s1204_s30 = smov (!%p220_p10, %s730_s30), 7  ;;  %vm328_vm0 = vcmask 1042432   ;;  %vm329_vm1 = vcmask 1043456   ;;  %p843_p0 = scmp.lt.s32.totalorder %s837_s15, %s1196_s5 }
  0x14   : > { %819 = vset.pattern.permute.xlu0 %v886_v0  ;;  %820 = vset.pattern.permute.xlu1 %v886_v0  ;;  %s731_s10 = sshll.u32 %s1204_s30, 2  ;;  %v887_v3 = vmov 65535   ;;  %v244_v7 = vld [vmem:[%s1193_s2 + $0x38] sm:$0xff]  ;;  %v242_v12 = vld [vmem:[%s1193_s2 + $0x28] sm:$0xff]  ;;  %v773_v22 = vld [vmem:[%s1192_s1] sm:$0xff]  ;;  %vm315_vm2 = vcmask 56320  }
  0x15   : > { %277 = vperm.xlu0 %819, %v243_v1   ;;  %267 = vperm.xlu1 %820, %v241_v2   ;;  %s223_s13 = scalar_lea.vmem %s1191_s0, %s731_s10  ;;  %v330_v4 = vsel %vm328_vm0, 4294967295, %v887_v3  ;;  %v237_v23 = vld [vmem:[%s1193_s2] sm:$0xff]  ;;  %v238_v24 = vld [vmem:[%s1193_s2 + $0x8] sm:$0xff]  ;;  %v239_v26 = vld [vmem:[%s1193_s2 + $0x10] sm:$0xff]  ;;  %s838_s16 = scalar_lea.hbm %s837_s15, 8 }
  0x16   : > { %821 = vset.pattern.permute.xlu2 %v886_v0  ;;  %v235_v5 = vld [vmem:[%s223_s13] sm:$0xff]  ;;  %v236_v6 = vld [vmem:[%s223_s13 + $0x8] sm:$0xff]  ;;  %v331_v13 = vsel %vm329_vm1, %v330_v4, 0  ;;  %v240_v27 = vld [vmem:[%s1193_s2 + $0x18] sm:$0xff]  ;;  %s663_s13 = sshll.u32 %s218_s12, 4  ;;  %p839_p11 = scmp.ne.s32.totalorder %s837_s15, %s838_s16  ;;  %s664_s13 = int_to_ptr.vmem [resolvable:$true] %s663_s13 }
  0x17   : > { %v307_v8 = vunpack.c.l.b16 %v235_v5  ;;  %v308_v9 = vunpack.c.h.b16 %v235_v5  ;;  %v309_v10 = vunpack.c.l.b16 %v236_v6  ;;  %v310_v11 = vunpack.c.h.b16 %v236_v6  ;;  %v774_v25 = vld [vmem:[%s1192_s1 + $0x8] sm:$0xff]  ;;  %257 = vperm.xlu2 %821, %v239_v26   ;;  %v775_v28 = vld [vmem:[%s1192_s1 + $0x10] sm:$0xff]  ;;  %v776_v29 = vld [vmem:[%s1192_s1 + $0x18] sm:$0xff]  ;;  %p844_p1 = scmp.lt.s32.totalorder %s842_s25, %s838_s16 }
  0x18   : > { %v573_v30 = vld [vmem:[%s1195_s4] sm:$0x3]  ;;  %p840_p12 = pnand %p839_p11, %p956_p5 }
  0x19   : > { %v311_v14 = vpack.c.b16 %v307_v8, %v307_v8  ;;  %v312_v15 = vpack.c.b16 %v308_v9, %v308_v9  ;;  %v313_v16 = vpack.c.b16 %v309_v10, %v309_v10  ;;  %v314_v17 = vpack.c.b16 %v310_v11, %v310_v11  ;;  %p845_p2 = por %p844_p1, %p843_p0 }
  0x1a   : > { %p841_p13 = pneg %p840_p12 }
  0x1b   : > { %v333_v18 = vand.u32 %v331_v13, %v311_v14  ;;  %v336_v19 = vand.u32 %v331_v13, %v312_v15  ;;  %v339_v20 = vand.u32 %v331_v13, %v313_v16  ;;  %v342_v21 = vand.u32 %v331_v13, %v314_v17 }
  0x1c   : > { %p846_p3 = pnand %p845_p2, %p841_p13 }
  0x1d   : > { %282 = vperm.xlu0 %819, %v244_v7   ;;  %272 = vperm.xlu1 %820, %v242_v12  }
  0x1e   : > { %351 = vmatpush.bf16.msra.mxu0 %v333_v18  ;;  %380 = vmatpush.bf16.msra.mxu1 %v336_v19 }
  0x1f   : > { %409 = vmatpush.bf16.msra.mxu2 %v339_v20  ;;  %438 = vmatpush.bf16.msra.mxu3 %v342_v21 }
  0x20   : > { %262 = vperm.xlu2 %821, %v240_v27  }
  0x21   : > { %748 = vmatmul.msk.bf16.vlgmr.msra.gmra.mxu0 %vm315_vm2, %v773_v22  ;;  %752 = vmatmul.msk.bf16.vlgmr.msra.gmra.mxu1 %vm315_vm2, %v773_v22 }
  0x22   : > { %756 = vmatmul.msk.bf16.vlgmr.msra.gmra.mxu2 %vm315_vm2, %v773_v22  ;;  %760 = vmatmul.msk.bf16.vlgmr.msra.gmra.mxu3 %vm315_vm2, %v773_v22 }
  0x25   : > { %247 = vperm.xlu0 %819, %v237_v23   ;;  %252 = vperm.xlu1 %820, %v238_v24  }
  0x28   : > { %576 = vperm.xlu2 %821, %v573_v30  }
  0x31   : > { %749 = vmatmul.msk.bf16.gmra.mxu0 %vm315_vm2, %v774_v25  ;;  %753 = vmatmul.msk.bf16.gmra.mxu1 %vm315_vm2, %v774_v25 }
  0x32   : > { %757 = vmatmul.msk.bf16.gmra.mxu2 %vm315_vm2, %v774_v25  ;;  %761 = vmatmul.msk.bf16.gmra.mxu3 %vm315_vm2, %v774_v25 }
  0x41   : > { %750 = vmatmul.msk.bf16.gmra.mxu0 %vm315_vm2, %v775_v28  ;;  %754 = vmatmul.msk.bf16.gmra.mxu1 %vm315_vm2, %v775_v28 }
  0x42   : > { %758 = vmatmul.msk.bf16.gmra.mxu2 %vm315_vm2, %v775_v28  ;;  %762 = vmatmul.msk.bf16.gmra.mxu3 %vm315_vm2, %v775_v28 }
  0x51   : > { %751 = vmatmul.msk.bf16.gmra.mxu0 %vm315_vm2, %v776_v29  ;;  %755 = vmatmul.msk.bf16.gmra.mxu1 %vm315_vm2, %v776_v29 }
  0x52   : > { %759 = vmatmul.msk.bf16.gmra.mxu2 %vm315_vm2, %v776_v29  ;;  %763 = vmatmul.msk.bf16.gmra.mxu3 %vm315_vm2, %v776_v29 }
  0x71   : > { %v258_v49 = vpop.permute.xlu2 %257 }
  0x7a   : > { %v263_v56 = vpop.permute.xlu2 %262 }
  0x87   : > { %v1030_v41 = vpop.permute.xlu0 %277  ;;  %v1032_v42 = vpop.permute.xlu1 %267 }
  0x8f   : > { %v1038_v47 = vpop.permute.xlu0 %282  ;;  %v1040_v48 = vpop.permute.xlu1 %272 }
  0x97   : > { %v248_v54 = vpop.permute.xlu0 %247  ;;  %v253_v55 = vpop.permute.xlu1 %252 }
  0x9e   : > { %v353_v31 = vpop.f32.mrf.mxu0  ;;  %v382_v32 = vpop.f32.mrf.mxu1 }
  0x9f   : > { %v354_v59 = vadd.f32 %v353_v31, %v248_v54  ;;  %v383_v62 = vadd.f32 %v382_v32, %v248_v54 }
  0xa1   : > { %vm460_vm3 = vcmp.gt.f32.partialorder %v354_v59, 0.0  ;;  %v492_v5 = vmul.f32 0.01, %v354_v59  ;;  %vm461_vm5 = vcmp.gt.f32.partialorder %v383_v62, 0.0  ;;  %v493_v7 = vmul.f32 0.01, %v383_v62 }
  0xa3   : > { %v1054_v19 = vsel %vm460_vm3, %v354_v59, %v492_v5  ;;  %v1057_v20 = vsel %vm461_vm5, %v383_v62, %v493_v7 }
  0xa5   : > { %v411_v33 = vpop.f32.mrf.mxu2  ;;  %v440_v34 = vpop.f32.mrf.mxu3 }
  0xa6   : > { %v355_v35 = vpop.f32.mrf.mxu0  ;;  %v384_v36 = vpop.f32.mrf.mxu1  ;;  %v1051_v18 = vadd.f32 %v411_v33, %v248_v54  ;;  %v1059_v21 = vadd.f32 %v440_v34, %v248_v54 }
  0xa7   : > { %v356_v63 = vadd.f32 %v355_v35, %v253_v55  ;;  %v385_v0 = vadd.f32 %v384_v36, %v253_v55 }
  0xa9   : > { %vm464_vm4 = vcmp.gt.f32.partialorder %v356_v63, 0.0  ;;  %v496_v6 = vmul.f32 0.01, %v356_v63  ;;  %vm465_vm7 = vcmp.gt.f32.partialorder %v385_v0, 0.0  ;;  %v497_v9 = vmul.f32 0.01, %v385_v0 }
  0xab   : > { %v1065_v23 = vsel %vm464_vm4, %v356_v63, %v496_v6  ;;  %v1068_v24 = vsel %vm465_vm7, %v385_v0, %v497_v9 }
  0xad   : > { %v1026_v37 = vpop.f32.mrf.mxu2  ;;  %v1028_v38 = vpop.f32.mrf.mxu3 }
  0xae   : > { %v358_v39 = vpop.f32.mrf.mxu0  ;;  %v387_v40 = vpop.f32.mrf.mxu1  ;;  %v1078_v29 = vadd.f32 %v1026_v37, %v253_v55  ;;  %v1083_v33 = vadd.f32 %v1028_v38, %v253_v55 }
  0xaf   : > { %v359_v1 = vadd.f32 %v358_v39, %v258_v49  ;;  %v388_v2 = vadd.f32 %v387_v40, %v258_v49 }
  0xb1   : > { %vm468_vm6 = vcmp.gt.f32.partialorder %v359_v1, 0.0  ;;  %v500_v8 = vmul.f32 0.01, %v359_v1  ;;  %v501_v13 = vmul.f32 0.01, %v388_v2  ;;  %vm469_vm9 = vcmp.gt.f32.partialorder %v388_v2, 0.0 }
  0xb3   : > { %v1062_v22 = vsel %vm468_vm6, %v359_v1, %v500_v8  ;;  %v1073_v27 = vsel %vm469_vm9, %v388_v2, %v501_v13 }
  0xb5   : > { %v1034_v43 = vpop.f32.mrf.mxu2  ;;  %v1036_v44 = vpop.f32.mrf.mxu3 }
  0xb6   : > { %v360_v45 = vpop.f32.mrf.mxu0  ;;  %v389_v46 = vpop.f32.mrf.mxu1  ;;  %v1088_v36 = vadd.f32 %v1034_v43, %v258_v49  ;;  %v1091_v39 = vadd.f32 %v1036_v44, %v258_v49 }
  0xb7   : > { %v361_v3 = vadd.f32 %v360_v45, %v263_v56  ;;  %v390_v4 = vadd.f32 %v389_v46, %v263_v56 }
  0xb9   : > { %v504_v12 = vmul.f32 0.01, %v361_v3  ;;  %v505_v14 = vmul.f32 0.01, %v390_v4  ;;  %vm472_vm8 = vcmp.gt.f32.partialorder %v361_v3, 0.0  ;;  %vm473_vm10 = vcmp.gt.f32.partialorder %v390_v4, 0.0 }
  0xbb   : > { %v1071_v26 = vsel %vm472_vm8, %v361_v3, %v504_v12  ;;  %v1075_v28 = vsel %vm473_vm10, %v390_v4, %v505_v14 }
  0xbc   : > { %v561_v37 = vpack.c.bf16 %v1071_v26, %v1062_v22  ;;  %v562_v40 = vpack.c.bf16 %v1075_v28, %v1073_v27  ;;  %v494_v27 = vmul.f32 0.01, %v1051_v18  ;;  %v495_v28 = vmul.f32 0.01, %v1059_v21 }
  0xbd   : > { %v1042_v50 = vpop.f32.mrf.mxu2  ;;  %v1044_v51 = vpop.f32.mrf.mxu3 }
  0xbe   : > { %v363_v52 = vpop.f32.mrf.mxu0  ;;  %v392_v53 = vpop.f32.mrf.mxu1  ;;  %v1098_v38 = vadd.f32 %v1042_v50, %v263_v56  ;;  %v1101_v45 = vadd.f32 %v1044_v51, %v263_v56 }
  0xbf   : > { %v364_v15 = vadd.f32 %v363_v52, %v1032_v42  ;;  %v393_v25 = vadd.f32 %v392_v53, %v1032_v42 }
  0xc1   : > { %v508_v30 = vmul.f32 0.01, %v364_v15  ;;  %vm476_vm11 = vcmp.gt.f32.partialorder %v364_v15, 0.0  ;;  %v509_v46 = vmul.f32 0.01, %v393_v25  ;;  %vm477_vm12 = vcmp.gt.f32.partialorder %v393_v25, 0.0 }
  0xc3   : > { %v540_v55 = vsel %vm476_vm11, %v364_v15, %v508_v30  ;;  %v541_v9 = vsel %vm477_vm12, %v393_v25, %v509_v46  ;;  %vm474_vm12 = vcmp.gt.f32.partialorder %v1098_v38, 0.0 }
  0xc5   : > { %v1046_v57 = vpop.f32.mrf.mxu2  ;;  %v1048_v58 = vpop.f32.mrf.mxu3 }
  0xc6   : > { %v365_v60 = vpop.f32.mrf.mxu0  ;;  %v394_v61 = vpop.f32.mrf.mxu1  ;;  %v422_v13 = vadd.f32 %v1046_v57, %v1032_v42 }
  0xc7   : > { %v366_v31 = vadd.f32 %v365_v60, %v1040_v48  ;;  %v395_v32 = vadd.f32 %v394_v61, %v1040_v48 }
  0xc8   : > { %vm478_vm10 = vcmp.gt.f32.partialorder %v422_v13, 0.0 }
  0xc9   : > { %v512_v43 = vmul.f32 0.01, %v366_v31  ;;  %v513_v54 = vmul.f32 0.01, %v395_v32  ;;  %vm480_vm13 = vcmp.gt.f32.partialorder %v366_v31, 0.0  ;;  %vm481_vm0 = vcmp.gt.f32.partialorder %v395_v32, 0.0 }
  0xcb   : > { %v544_v2 = vsel %vm480_vm13, %v366_v31, %v512_v43  ;;  %v545_v12 = vsel %vm481_vm0, %v395_v32, %v513_v54  ;;  %v506_v43 = vmul.f32 0.01, %v1098_v38  ;;  %v507_v54 = vmul.f32 0.01, %v1101_v45 }
  0xcc   : > { %v565_v14 = vpack.c.bf16 %v544_v2, %v540_v55  ;;  %v566_v31 = vpack.c.bf16 %v545_v12, %v541_v9  ;;  %v557_v55 = vpack.c.bf16 %v1065_v23, %v1054_v19  ;;  %vm475_vm13 = vcmp.gt.f32.partialorder %v1101_v45, 0.0 }
  0xcd   : > { %v423_v10 = vpop.f32.mrf.mxu2  ;;  %v452_v11 = vpop.f32.mrf.mxu3  ;;  %v538_v22 = vsel %vm474_vm12, %v1098_v38, %v506_v43  ;;  %v539_v26 = vsel %vm475_vm13, %v1101_v45, %v507_v54  ;;  %vm466_vm0 = vcmp.gt.f32.partialorder %v1078_v29, 0.0 }
  0xce   : > { %v368_v16 = vpop.f32.mrf.mxu0  ;;  %v397_v17 = vpop.f32.mrf.mxu1  ;;  %v424_v63 = vadd.f32 %v423_v10, %v1040_v48  ;;  %v453_v0 = vadd.f32 %v452_v11, %v1040_v48  ;;  %v451_v48 = vadd.f32 %v1048_v58, %v1032_v42  ;;  %v510_v42 = vmul.f32 0.01, %v422_v13 }
  0xcf   : > { %v369_v34 = vadd.f32 %v368_v16, %v1030_v41  ;;  %v398_v35 = vadd.f32 %v397_v17, %v1030_v41 }
  0xd0   : > { %v514_v25 = vmul.f32 0.01, %v424_v63  ;;  %v515_v30 = vmul.f32 0.01, %v453_v0  ;;  %vm482_vm8 = vcmp.gt.f32.partialorder %v424_v63, 0.0  ;;  %vm483_vm9 = vcmp.gt.f32.partialorder %v453_v0, 0.0 }
  0xd1   : > { %v516_v59 = vmul.f32 0.01, %v369_v34  ;;  %v517_v60 = vmul.f32 0.01, %v398_v35  ;;  %vm484_vm14 = vcmp.gt.f32.partialorder %v369_v34, 0.0  ;;  %vm485_vm15 = vcmp.gt.f32.partialorder %v398_v35, 0.0 }
  0xd2   : > { %vm479_vm11 = vcmp.gt.f32.partialorder %v451_v48, 0.0  ;;  %v542_v19 = vsel %vm478_vm10, %v422_v13, %v510_v42 }
  0xd3   : > { %v548_v3 = vsel %vm484_vm14, %v369_v34, %v516_v59  ;;  %v549_v5 = vsel %vm485_vm15, %v398_v35, %v517_v60  ;;  %v511_v34 = vmul.f32 0.01, %v451_v48  ;;  %v558_v59 = vpack.c.bf16 %v1068_v24, %v1057_v20 }
  0xd4   : > { %v502_v60 = vmul.f32 0.01, %v1088_v36  ;;  %vm470_vm14 = vcmp.gt.f32.partialorder %v1088_v36, 0.0  ;;  %vm471_vm15 = vcmp.gt.f32.partialorder %v1091_v39, 0.0 }
  0xd5   : > { %v426_v52 = vpop.f32.mrf.mxu2  ;;  %v455_v53 = vpop.f32.mrf.mxu3  ;;  %v543_v20 = vsel %vm479_vm11, %v451_v48, %v511_v34 }
  0xd6   : > { %v370_v44 = vpop.f32.mrf.mxu0  ;;  %v399_v49 = vpop.f32.mrf.mxu1  ;;  %v427_v51 = vadd.f32 %v426_v52, %v1030_v41  ;;  %v456_v1 = vadd.f32 %v455_v53, %v1030_v41 }
  0xd7   : > { %v371_v61 = vadd.f32 %v370_v44, %v1038_v47  ;;  %v400_v50 = vadd.f32 %v399_v49, %v1038_v47  ;;  %v546_v44 = vsel %vm482_vm8, %v424_v63, %v514_v25  ;;  %v547_v49 = vsel %vm483_vm9, %v453_v0, %v515_v30 }
  0xd8   : > { %v518_v10 = vmul.f32 0.01, %v427_v51  ;;  %v519_v15 = vmul.f32 0.01, %v456_v1  ;;  %vm486_vm4 = vcmp.gt.f32.partialorder %v427_v51, 0.0  ;;  %vm487_vm5 = vcmp.gt.f32.partialorder %v456_v1, 0.0 }
  0xd9   : > { %v520_v56 = vmul.f32 0.01, %v371_v61  ;;  %v521_v62 = vmul.f32 0.01, %v400_v50  ;;  %vm488_vm2 = vcmp.gt.f32.partialorder %v371_v61, 0.0  ;;  %vm489_vm3 = vcmp.gt.f32.partialorder %v400_v50, 0.0 }
  0xda   : > { %v550_v58 = vsel %vm486_vm4, %v427_v51, %v518_v10  ;;  %v567_v23 = vpack.c.bf16 %v546_v44, %v542_v19  ;;  %v568_v24 = vpack.c.bf16 %v547_v49, %v543_v20  ;;  %v499_v51 = vmul.f32 0.01, %v1083_v33 }
  0xdb   : > { %v552_v4 = vsel %vm488_vm2, %v371_v61, %v520_v56  ;;  %v553_v6 = vsel %vm489_vm3, %v400_v50, %v521_v62  ;;  %v503_v61 = vmul.f32 0.01, %v1091_v39  ;;  %v498_v50 = vmul.f32 0.01, %v1078_v29  ;;  %v556_v56 = vld [vmem:[%s1194_s3] sm:$0x1] }
  0xdc   : > { %v569_v7 = vpack.c.bf16 %v552_v4, %v548_v3  ;;  %v570_v8 = vpack.c.bf16 %v553_v6, %v549_v5  ;;  %vm467_vm2 = vcmp.gt.f32.partialorder %v1083_v33, 0.0  ;;  %vm462_vm3 = vcmp.gt.f32.partialorder %v1051_v18, 0.0  ;;  %v577_v3 = vpop.permute.xlu2 %576 }
  0xdd   : > { %v428_v41 = vpop.f32.mrf.mxu2  ;;  %v457_v11 = vpop.f32.mrf.mxu3  ;;  %vm579_vm4 = vcmask 523264   ;;  %v530_v62 = vsel %vm466_vm0, %v1078_v29, %v498_v50  ;;  %v531_v63 = vsel %vm467_vm2, %v1083_v33, %v499_v51 }
  0xde   : > { %v429_v16 = vadd.f32 %v428_v41, %v1038_v47  ;;  %v458_v17 = vadd.f32 %v457_v11, %v1038_v47  ;;  %587 = vmatpush.bf16.msrb.mxu0 %v569_v7  ;;  %600 = vmatpush.bf16.msrb.mxu1 %v570_v8  ;;  %v551_v47 = vsel %vm487_vm5, %v456_v1, %v519_v15  ;;  %vm463_vm5 = vcmp.gt.f32.partialorder %v1059_v21, 0.0 }
  0xe0   : > { %v522_v57 = vmul.f32 0.01, %v429_v16  ;;  %v523_v32 = vmul.f32 0.01, %v458_v17  ;;  %vm490_vm6 = vcmp.gt.f32.partialorder %v429_v16, 0.0  ;;  %vm491_vm7 = vcmp.gt.f32.partialorder %v458_v17, 0.0 }
  0xe2   : > { %588 = vmatpush.bf16.msrb.mxu0 %v565_v14  ;;  %601 = vmatpush.bf16.msrb.mxu1 %v566_v31  ;;  %v554_v35 = vsel %vm490_vm6, %v429_v16, %v522_v57  ;;  %v555_v46 = vsel %vm491_vm7, %v458_v17, %v523_v32  ;;  %vm642_vm6 = vcmask 1041408   ;;  %vm644_vm7 = vcmask 1045508  }
  0xe3   : > { %v571_v52 = vpack.c.bf16 %v554_v35, %v550_v58  ;;  %v572_v53 = vpack.c.bf16 %v555_v46, %v551_v47 }
  0xe5   : > { %613 = vmatpush.bf16.msrb.mxu2 %v571_v52  ;;  %626 = vmatpush.bf16.msrb.mxu3 %v572_v53 }
  0xe6   : > { %589 = vmatpush.bf16.msrb.mxu0 %v561_v37  ;;  %602 = vmatpush.bf16.msrb.mxu1 %v562_v40  ;;  %v534_v37 = vsel %vm470_vm14, %v1088_v36, %v502_v60  ;;  %v535_v40 = vsel %vm471_vm15, %v1091_v39, %v503_v61  ;;  %v526_v36 = vsel %vm462_vm3, %v1051_v18, %v494_v27 }
  0xe7   : > { %v563_v38 = vpack.c.bf16 %v538_v22, %v534_v37  ;;  %v564_v45 = vpack.c.bf16 %v539_v26, %v535_v40  ;;  %v527_v39 = vsel %vm463_vm5, %v1059_v21, %v495_v28  ;;  %v559_v0 = vpack.c.bf16 %v530_v62, %v526_v36 }
  0xe8   : > { %v560_v1 = vpack.c.bf16 %v531_v63, %v527_v39 }
  0xe9   : > { %614 = vmatpush.bf16.msrb.mxu2 %v567_v23  ;;  %627 = vmatpush.bf16.msrb.mxu3 %v568_v24 }
  0xea   : > { %590 = vmatpush.bf16.msrb.mxu0 %v557_v55  ;;  %603 = vmatpush.bf16.msrb.mxu1 %v558_v59 }
  0xed   : > { %615 = vmatpush.bf16.msrb.mxu2 %v563_v38  ;;  %628 = vmatpush.bf16.msrb.mxu3 %v564_v45 }
  0xee   : > { %764 = vmatmul.msk.bf16.vlgmr.msrb.gmra.mxu0 %vm579_vm4, %v556_v56  ;;  %765 = vmatmul.msk.bf16.vlgmr.msrb.gmra.mxu1 %vm579_vm4, %v556_v56 }
  0xf1   : > { %616 = vmatpush.bf16.msrb.mxu2 %v559_v0  ;;  %629 = vmatpush.bf16.msrb.mxu3 %v560_v1 }
  0xf4   : > { %766 = vmatmul.msk.bf16.vlgmr.msrb.gmra.mxu2 %vm579_vm4, %v556_v56  ;;  %767 = vmatmul.msk.bf16.vlgmr.msrb.gmra.mxu3 %vm579_vm4, %v556_v56 }
 0x16b   : > { %v592_v2 = vpop.f32.mrf.mxu0  ;;  %v605_v29 = vpop.f32.mrf.mxu1 }
 0x16c   : > { %v606_v5 = vadd.f32 %v605_v29, %v577_v3  ;;  %v593_v9 = vadd.f32 %v592_v2, %v577_v3 }
 0x16e   : > { %v639_v6 = vrot.slane %v606_v5, 6 }
 0x170   : > { %v643_v48 = vsel %vm642_vm6, %v593_v9, %v639_v6 }
 0x173   : > { %v594_v33 = vpop.f32.mrf.mxu0  ;;  %v607_v4 = vpop.f32.mrf.mxu1 }
 0x177   : > { %v618_v18 = vpop.f32.mrf.mxu2  ;;  %v631_v21 = vpop.f32.mrf.mxu3 }
 0x178   : > { %v619_v7 = vadd.f32 %v618_v18, %v577_v3  ;;  %v632_v8 = vadd.f32 %v631_v21, %v577_v3 }
 0x17a   : > { %v640_v12 = vrot.slane %v619_v7, 4  ;;  %v641_v13 = vrot.slane %v632_v8, 2 }
 0x17c   : > { %v645_v10 = vsel %vm644_vm7, %v640_v12, %v641_v13 }
 0x17d   : > { %v646_v41 = vsel %vm329_vm1, %v643_v48, %v645_v10 }
 0x17e   : > { %648 = vst [vmem:[%s218_s12] sm:$0xff] %v646_v41 }
 0x17f   : > { %v620_v11 = vpop.f32.mrf.mxu2  ;;  %v633_v14 = vpop.f32.mrf.mxu3 }
 0x180   : > { %849 = shalt.err (!%p846_p3)
}
 0x181   : > { %778 = dma.vmem_to_hbm [thread:$0]  (%p956_p5), %s664_s13, 128, %s666_s14, %s650_s22  }
 0x182 PF: > { %p784_p4 = scmp.ge.s32.totalorder %s884_s21, 2  ;;  %s677_s6 = sand.u32 1, %s872_s18  }
 0x183   : > { %s678_s7 = scalar_lea.sflag [#allocation3], %s677_s6 }
 0x184   : > { %p781_p7 = pnand %p784_p4, %p960_p6 }
 0x186   : > { %p782_p8 = pneg %p781_p7 }
 0x188   : > { %867 = dma.done.wait (%p782_p8), %s678_s7, 128  }
 0x189   : > { %869 = vsyncadd (%p782_p8), %s678_s7, 4294967168  ;;  %p15_p9 = scmp.ge.s32.totalorder %s943_s24, 4   ;;  %s1199_s18 = smov %s876_s19 }
 0x18a   : > { %s1200_s19 = smov %s880_s20  ;;  %s1201_s20 = smov %s954_s27 }
 0x18b   : > { %s1202_s21 = smov %s943_s24  ;;  %17 = sbr.rel (!%p15_p9) target bundleno = 3 (0x3), region = 75 }
 0x190   :  { %684 = vsyncpa [#allocation3], 1 }
 0x191   :  { %686 = vsyncpa [#allocation3 + $0x1], 1 }

</bundles_post_ra>
